<compile_context>
chip_gen: v6e
topology: v6e:2x2x1
jax: 0.10.0
libtpu: 0.0.40
codegen_flags: <defaults>
</compile_context>

<pallas_src>
import functools

import jax
import jax.numpy as jnp
from jax.experimental import pallas as pl
from jax.experimental.pallas import tpu as pltpu

LANE = 128
SUBLANE = 8


def _round_up(n, m):
    return (n + m - 1) // m * m


def mlp_kernel(x_ref, w1t_ref, w2t_ref, w3t_ref, o_ref):
    # Fused 3-layer MLP on one batch tile.
    # bf16 x bf16 -> f32 accumulate on the MXU; ReLU in f32 on the VPU,
    # then downcast to bf16 only to feed the next MXU matmul.
    h1 = jnp.maximum(
        jnp.dot(x_ref[...], w1t_ref[...], preferred_element_type=jnp.float32), 0.0
    )
    h2 = jnp.maximum(
        jnp.dot(h1.astype(w2t_ref.dtype), w2t_ref[...],
                preferred_element_type=jnp.float32), 0.0
    )
    o_ref[...] = jnp.dot(
        h2.astype(w3t_ref.dtype), w3t_ref[...],
        preferred_element_type=jnp.float32
    ).astype(o_ref.dtype)


@functools.partial(jax.jit, static_argnames=("tb",))
def mlp_forward(x, w1, w2, w3, *, tb=128):
    """x: (B, 784) f32; w1: (H, 784); w2: (H, H); w3: (10, H)  (PyTorch (out,in) layout)."""
    B, D = x.shape
    H = w1.shape[0]
    O = w3.shape[0]

    Dp = _round_up(D, LANE)                      # 784 -> 896 lane-aligned K
    Op = _round_up(O, LANE)                      # 10  -> 128 lane-dense output
    tb_eff = min(tb, _round_up(B, SUBLANE))      # clamp tile for tiny batches
    Bp = _round_up(B, tb_eff)                    # no ragged batch blocks

    cdt = jnp.bfloat16
    # Pre-transpose to (in, out), zero-pad, cast to bf16. Under jit these fold
    # into one-time layout ops (and constant-fold for fixed weights).
    w1t = jnp.pad(w1.T, ((0, Dp - D), (0, 0))).astype(cdt)
    w2t = w2.T.astype(cdt)
    w3t = jnp.pad(w3.T, ((0, 0), (0, Op - O))).astype(cdt)
    xp = jnp.pad(x, ((0, Bp - B), (0, Dp - D))).astype(cdt)

    flops = 2 * Bp * (Dp * H + H * H + H * Op)
    bytes_accessed = (xp.size + w1t.size + w2t.size + w3t.size) * 2 + Bp * Op * 4

    grid = (Bp // tb_eff,)
    out = pl.pallas_call(
        mlp_kernel,
        out_shape=jax.ShapeDtypeStruct((Bp, Op), jnp.float32),
        grid_spec=pltpu.PrefetchScalarGridSpec(
            num_scalar_prefetch=0,
            grid=grid,
            in_specs=[
                pl.BlockSpec((tb_eff, Dp), lambda i: (i, 0)),  # x tile over batch
                pl.BlockSpec((Dp, H), lambda i: (0, 0)),       # w1t (full, VMEM-resident)
                pl.BlockSpec((H, H), lambda i: (0, 0)),        # w2t (full, VMEM-resident)
                pl.BlockSpec((H, Op), lambda i: (0, 0)),       # w3t (full, lane-padded)
            ],
            out_specs=pl.BlockSpec((tb_eff, Op), lambda i: (i, 0)),
        ),
        compiler_params=pltpu.CompilerParams(
            dimension_semantics=("parallel",),   # shard batch tiles across TCs on v7x
        ),
        cost_estimate=pl.CostEstimate(
            flops=flops, transcendentals=0, bytes_accessed=bytes_accessed
        ),
    )(xp, w1t, w2t, w3t)
    return out[:B, :O]


if __name__ == "__main__":
    B, IN, H, OUT = 256, 28 * 28, 128, 10

    key = jax.random.PRNGKey(0)
    kx, k1, k2, k3 = jax.random.split(key, 4)

    # Deterministic synthetic parameters (PyTorch nn.Linear weight shape: (out, in)).
    x = jax.random.normal(kx, (B, IN), dtype=jnp.float32)
    w1 = jax.random.normal(k1, (H, IN), dtype=jnp.float32) * (1.0 / IN ** 0.5)
    w2 = jax.random.normal(k2, (H, H), dtype=jnp.float32) * (1.0 / H ** 0.5)
    w3 = jax.random.normal(k3, (OUT, H), dtype=jnp.float32) * (1.0 / H ** 0.5)

    # tb=128 -> 2 grid steps (keeps both v7x TensorCores busy even at this size).
    out = jax.block_until_ready(mlp_forward(x, w1, w2, w3, tb=128))

    # Pure-JAX reference with the same bf16 operand quantization and f32
    # accumulate, so the only difference vs. the kernel is MXU accumulation order.
    bf = lambda a: a.astype(jnp.bfloat16).astype(jnp.float32)
    ref = jnp.maximum(bf(x) @ bf(w1).T, 0.0)
    ref = jnp.maximum(bf(ref) @ bf(w2).T, 0.0)
    ref = bf(ref) @ bf(w3).T

    assert out.shape == (B, OUT)
    assert jnp.allclose(out, ref, rtol=2e-2, atol=2e-2), "mismatch vs JAX reference"

    print("KERNEL_OK")
</pallas_src>

<mosaic_0001>
module attributes {stable_mosaic.version = 11 : i64} {
  func.func @mlp_kernel(%arg0: i32, %arg1: memref<128x896xbf16, #tpu.memory_space<vmem>>, %arg2: memref<896x128xbf16, #tpu.memory_space<vmem>>, %arg3: memref<128x128xbf16, #tpu.memory_space<vmem>>, %arg4: memref<128x128xbf16, #tpu.memory_space<vmem>>, %arg5: memref<128x128xf32, #tpu.memory_space<vmem>>) attributes {dimension_semantics = [#tpu.dimension_semantics<parallel>], iteration_bounds = array<i64: 2>, scalar_prefetch = 0 : i64, scratch_operands = 0 : i64, tpu.core_type = #tpu.core_type<tc>, window_params = [{transform_indices = @transform_0, window_bounds = array<i64: 128, 896>}, {pipeline_mode = #tpu.pipeline_mode<synchronous>, transform_indices = @transform_1, window_bounds = array<i64: 896, 128>}, {pipeline_mode = #tpu.pipeline_mode<synchronous>, transform_indices = @transform_2, window_bounds = array<i64: 128, 128>}, {pipeline_mode = #tpu.pipeline_mode<synchronous>, transform_indices = @transform_3, window_bounds = array<i64: 128, 128>}, {transform_indices = @transform_4, window_bounds = array<i64: 128, 128>}]} {
    %c0 = arith.constant 0 : index
    %c0_0 = arith.constant 0 : index
    %0 = vector.load %arg1[%c0, %c0_0] : memref<128x896xbf16, #tpu.memory_space<vmem>>, vector<128x896xbf16>
    %c0_1 = arith.constant 0 : index
    %c0_2 = arith.constant 0 : index
    %1 = vector.load %arg2[%c0_1, %c0_2] : memref<896x128xbf16, #tpu.memory_space<vmem>>, vector<896x128xbf16>
    %cst = arith.constant dense<0.000000e+00> : vector<128x128xf32>
    %2 = tpu.matmul %0, %1, %cst {dimension_numbers = #tpu.dot_dimension_numbers<[1], [0], [0], [1], [0, 0, 1, 1], [], []>} : vector<128x896xbf16>, vector<896x128xbf16>, vector<128x128xf32> -> vector<128x128xf32>
    %cst_3 = arith.constant 0.000000e+00 : f32
    %3 = vector.broadcast %cst_3 : f32 to vector<128x128xf32>
    %4 = arith.maximumf %2, %3 : vector<128x128xf32>
    %5 = arith.truncf %4 : vector<128x128xf32> to vector<128x128xbf16>
    %c0_4 = arith.constant 0 : index
    %c0_5 = arith.constant 0 : index
    %6 = vector.load %arg3[%c0_4, %c0_5] : memref<128x128xbf16, #tpu.memory_space<vmem>>, vector<128x128xbf16>
    %cst_6 = arith.constant dense<0.000000e+00> : vector<128x128xf32>
    %7 = tpu.matmul %5, %6, %cst_6 {dimension_numbers = #tpu.dot_dimension_numbers<[1], [0], [0], [1], [0, 0, 1, 1], [], []>} : vector<128x128xbf16>, vector<128x128xbf16>, vector<128x128xf32> -> vector<128x128xf32>
    %cst_7 = arith.constant 0.000000e+00 : f32
    %8 = vector.broadcast %cst_7 : f32 to vector<128x128xf32>
    %9 = arith.maximumf %7, %8 : vector<128x128xf32>
    %10 = arith.truncf %9 : vector<128x128xf32> to vector<128x128xbf16>
    %c0_8 = arith.constant 0 : index
    %c0_9 = arith.constant 0 : index
    %11 = vector.load %arg4[%c0_8, %c0_9] : memref<128x128xbf16, #tpu.memory_space<vmem>>, vector<128x128xbf16>
    %cst_10 = arith.constant dense<0.000000e+00> : vector<128x128xf32>
    %12 = tpu.matmul %10, %11, %cst_10 {dimension_numbers = #tpu.dot_dimension_numbers<[1], [0], [0], [1], [0, 0, 1, 1], [], []>} : vector<128x128xbf16>, vector<128x128xbf16>, vector<128x128xf32> -> vector<128x128xf32>
    %c0_11 = arith.constant 0 : index
    %c0_12 = arith.constant 0 : index
    %13 = vector.load %arg5[%c0_11, %c0_12] : memref<128x128xf32, #tpu.memory_space<vmem>>, vector<128x128xf32>
    tpu.vector_store %arg5[%c0_11, %c0_12], %12 {strides = array<i32>} : memref<128x128xf32, #tpu.memory_space<vmem>>, vector<128x128xf32>,
    return
  }
  func.func @transform_0(%arg0: i32) -> (i32, i32) {
    %c0_i32 = arith.constant 0 : i32
    %c0_i32_0 = arith.constant 0 : i32
    return %arg0, %c0_i32 : i32, i32
  }
  func.func @transform_1(%arg0: i32) -> (i32, i32) {
    %c0_i32 = arith.constant 0 : i32
    %c0_i32_0 = arith.constant 0 : i32
    %c0_i32_1 = arith.constant 0 : i32
    return %c0_i32, %c0_i32_0 : i32, i32
  }
  func.func @transform_2(%arg0: i32) -> (i32, i32) {
    %c0_i32 = arith.constant 0 : i32
    %c0_i32_0 = arith.constant 0 : i32
    %c0_i32_1 = arith.constant 0 : i32
    return %c0_i32, %c0_i32_0 : i32, i32
  }
  func.func @transform_3(%arg0: i32) -> (i32, i32) {
    %c0_i32 = arith.constant 0 : i32
    %c0_i32_0 = arith.constant 0 : i32
    %c0_i32_1 = arith.constant 0 : i32
    return %c0_i32, %c0_i32_0 : i32, i32
  }
  func.func @transform_4(%arg0: i32) -> (i32, i32) {
    %c0_i32 = arith.constant 0 : i32
    %c0_i32_0 = arith.constant 0 : i32
    return %arg0, %c0_i32 : i32, i32
  }
}

</mosaic_0001>

<bundles_post_ra>
// kernel: mlp_forward.1
= control target key start
LH: loop header
LB: loop body
LE: loop exit
PB: predicated region body
PF: predicated region fallthrough
CT: control target
= control target key end

     0   :  { %s2520_s15 = smov 0   ;;  %s2985_s0 = inlined_call_operand.vmem [shape: bf16[256,896], index: 0, kind: input, shape index: {}]   ;;  %s2986_s1 = inlined_call_operand.vmem [shape: bf16[896,128], index: 1, kind: input, shape index: {}]   ;;  %s2987_s2 = inlined_call_operand.vmem [shape: bf16[128,128], index: 2, kind: input, shape index: {}]   ;;  %s2988_s3 = inlined_call_operand.vmem [shape: bf16[128,128], index: 3, kind: input, shape index: {}]   ;;  %s2989_s4 = inlined_call_operand.vmem [shape: f32[256,128], index: 4, kind: output, shape index: {}]  }
   0x1 LB: > { %s1835_s16 = sadd.s32 4294967295, %s2493_s15   ;;  %p1839_p0 = scmp.ge.s32.totalorder %s2493_s15, 1  ;;  %s2493_s15 = sphi %s2520_s15, %s14_s15  }
   0x2   : > { %p164_p1 = scmp.lt.s32.totalorder %s2493_s15, 3 }
   0x4   : > { %p165_p2 = pnand %p1839_p0, %p164_p1 }
   0x5   : > { %s1840_s23 = sshll.u32 (!%p165_p2), %s1835_s16, 4 }
   0x6   : > { %168 = sbr.rel (%p165_p2) target bundleno = 778 (0x30a), region = 36  ;;  %p192_p3 = scmp.lt.s32.totalorder (!%p165_p2), %s1840_s23, 31 }
   0xb   : > { %v2335_v0 = vld [vmem:[%s2986_s1 + $0x78] sm:$0xff]   ;;  %v2339_v4 = vld [vmem:[%s2986_s1 + $0x70] sm:$0xff]   ;;  %v2343_v8 = vld [vmem:[%s2986_s1 + $0x68] sm:$0xff]   ;;  %s2991_s23 = smov (!%p192_p3, %s1840_s23), 31 }
   0xc   : > { %v2336_v1 = vld [vmem:[%s2986_s1 + $0xf8] sm:$0xff]   ;;  %1974 = vmatprep.subr.bf16.mxu0 %v2335_v0  ;;  %v2340_v5 = vld [vmem:[%s2986_s1 + $0xf0] sm:$0xff]   ;;  %v2344_v9 = vld [vmem:[%s2986_s1 + $0xe8] sm:$0xff]   ;;  %s2326_s21 = smul.u32 28, %s2991_s23  ;;  %s1843_s22 = sshll.u32 %s2991_s23, 3 }
   0xd   : > { %v2337_v2 = vld [vmem:[%s2986_s1 + $0x38] sm:$0xff]   ;;  %2038 = vmatprep.subr.bf16.mxu1 %v2336_v1  ;;  %v2341_v6 = vld [vmem:[%s2986_s1 + $0x30] sm:$0xff]   ;;  %v2345_v10 = vld [vmem:[%s2986_s1 + $0x28] sm:$0xff]   ;;  %s2964_s26 = scalar_lea.vmem %s2989_s4, %s1843_s22 }
   0xe   : > { %v2338_v3 = vld [vmem:[%s2986_s1 + $0xb8] sm:$0xff]   ;;  %1975 = vmatpush3.bf16.msra.mxu0 %v2337_v2  ;;  %v2342_v7 = vld [vmem:[%s2986_s1 + $0xb0] sm:$0xff]   ;;  %v2346_v11 = vld [vmem:[%s2986_s1 + $0xa8] sm:$0xff]   ;;  %s2626_s6 = scalar_lea.vmem %s2985_s0, %s2326_s21 }
   0xf   : > { %2039 = vmatpush3.bf16.msra.mxu1 %v2338_v3  ;;  %1976 = vmatprep.subr.bf16.mxu0 %v2339_v4  ;;  %v2347_v12 = vld [vmem:[%s2986_s1 + $0x60] sm:$0xff]   ;;  %v2351_v16 = vld [vmem:[%s2986_s1 + $0x58] sm:$0xff]   ;;  %v2355_v20 = vld [vmem:[%s2986_s1 + $0x50] sm:$0xff]  }
  0x10   : > { %2040 = vmatprep.subr.bf16.mxu1 %v2340_v5  ;;  %v2348_v13 = vld [vmem:[%s2986_s1 + $0xe0] sm:$0xff]   ;;  %v2352_v17 = vld [vmem:[%s2986_s1 + $0xd8] sm:$0xff]   ;;  %v2356_v21 = vld [vmem:[%s2986_s1 + $0xd0] sm:$0xff]  }
  0x11   : > { %v2349_v14 = vld [vmem:[%s2986_s1 + $0x20] sm:$0xff]   ;;  %v2353_v18 = vld [vmem:[%s2986_s1 + $0x18] sm:$0xff]   ;;  %v2357_v22 = vld [vmem:[%s2986_s1 + $0x10] sm:$0xff]  }
  0x12   : > { %1977 = vmatpush3.bf16.msra.mxu0 %v2341_v6  ;;  %v2350_v15 = vld [vmem:[%s2986_s1 + $0xa0] sm:$0xff]   ;;  %v2354_v19 = vld [vmem:[%s2986_s1 + $0x98] sm:$0xff]   ;;  %v2358_v23 = vld [vmem:[%s2986_s1 + $0x90] sm:$0xff]  }
  0x13   : > { %2041 = vmatpush3.bf16.msra.mxu1 %v2342_v7  ;;  %1978 = vmatprep.subr.bf16.mxu0 %v2343_v8  ;;  %v2359_v24 = vld [vmem:[%s2986_s1 + $0x48] sm:$0xff]   ;;  %v2363_v28 = vld [vmem:[%s2986_s1 + $0x40] sm:$0xff]   ;;  %v2373_v36 = vld [vmem:[%s2986_s1 + $0x178] sm:$0xff]  }
  0x14   : > { %2042 = vmatprep.subr.bf16.mxu1 %v2344_v9  ;;  %v2360_v25 = vld [vmem:[%s2986_s1 + $0xc8] sm:$0xff]   ;;  %v2364_v29 = vld [vmem:[%s2986_s1 + $0xc0] sm:$0xff]   ;;  %v2374_v37 = vld [vmem:[%s2986_s1 + $0x138] sm:$0xff]  }
  0x15   : > { %v2361_v26 = vld [vmem:[%s2986_s1 + $0x8] sm:$0xff]   ;;  %v2365_v30 = vld [vmem:[%s2986_s1] sm:$0xff]   ;;  %v2375_v38 = vld [vmem:[%s2626_s6 + $0x3c] ss:$28 sps:$4 sm:$0xff]  }
  0x16   : > { %1979 = vmatpush3.bf16.msra.mxu0 %v2345_v10  ;;  %v2362_v27 = vld [vmem:[%s2986_s1 + $0x88] sm:$0xff]   ;;  %v2366_v31 = vld [vmem:[%s2986_s1 + $0x80] sm:$0xff]   ;;  %v2379_v40 = vld [vmem:[%s2626_s6 + $0x38] ss:$28 sps:$4 sm:$0xff]  }
  0x17   : > { %2043 = vmatpush3.bf16.msra.mxu1 %v2346_v11  ;;  %1980 = vmatprep.subr.bf16.mxu0 %v2347_v12  ;;  %v2367_v32 = vld [vmem:[%s2626_s6] ss:$28 sps:$4 sm:$0xff]   ;;  %v2370_v34 = vld [vmem:[%s2626_s6 + $0x8] ss:$28 sps:$4 sm:$0xff]   ;;  %v2381_v42 = vld [vmem:[%s2986_s1 + $0x170] sm:$0xff]  }
  0x18   : > { %2044 = vmatprep.subr.bf16.mxu1 %v2348_v13  ;;  %v2369_v33 = vld [vmem:[%s2626_s6 + $0x4] ss:$28 sps:$4 sm:$0xff]   ;;  %v2372_v35 = vld [vmem:[%s2626_s6 + $0xc] ss:$28 sps:$4 sm:$0xff]   ;;  %v2382_v43 = vld [vmem:[%s2986_s1 + $0x130] sm:$0xff]  }
  0x19   : > { %1037 = vmatprep.mubr.bf16.mxu0 %v2369_v33  ;;  %1134 = vmatprep.mubr.bf16.mxu1 %v2372_v35  ;;  %v2377_v39 = vld [vmem:[%s2626_s6 + $0x44] ss:$28 sps:$4 sm:$0xff]   ;;  %v2383_v44 = vld [vmem:[%s2626_s6 + $0x74] ss:$28 sps:$4 sm:$0xff]   ;;  %v2385_v45 = vld [vmem:[%s2626_s6 + $0x7c] ss:$28 sps:$4 sm:$0xff]  }
  0x1a   : > { %1981 = vmatpush3.bf16.msra.mxu0 %v2349_v14  ;;  %v2380_v41 = vld [vmem:[%s2626_s6 + $0x40] ss:$28 sps:$4 sm:$0xff]   ;;  %v2389_v46 = vld [vmem:[%s2986_s1 + $0x168] sm:$0xff]   ;;  %v2388_v49 = vld [vmem:[%s2626_s6 + $0x78] ss:$28 sps:$4 sm:$0xff]  }
  0x1b   : > { %2045 = vmatpush3.bf16.msra.mxu1 %v2350_v15  ;;  %1982 = vmatprep.subr.bf16.mxu0 %v2351_v16  ;;  %v2390_v47 = vld [vmem:[%s2986_s1 + $0x128] sm:$0xff]   ;;  %v2393_v51 = vld [vmem:[%s2626_s6 + $0xb4] ss:$28 sps:$4 sm:$0xff]   ;;  %v2397_v52 = vld [vmem:[%s2986_s1 + $0x160] sm:$0xff]  }
  0x1c   : > { %2046 = vmatprep.subr.bf16.mxu1 %v2352_v17  ;;  %v2387_v48 = vld [vmem:[%s2626_s6 + $0x70] ss:$28 sps:$4 sm:$0xff]   ;;  %v2398_v53 = vld [vmem:[%s2986_s1 + $0x120] sm:$0xff]   ;;  %v2405_v55 = vld [vmem:[%s2986_s1 + $0x158] sm:$0xff]  }
  0x1d   : > { %v2391_v50 = vld [vmem:[%s2626_s6 + $0xac] ss:$28 sps:$4 sm:$0xff]   ;;  %v2406_v57 = vld [vmem:[%s2986_s1 + $0x118] sm:$0xff]   ;;  %v2399_v59 = vld [vmem:[%s2626_s6 + $0xe4] ss:$28 sps:$4 sm:$0xff]  }
  0x1e   : > { %1983 = vmatpush3.bf16.msra.mxu0 %v2353_v18  ;;  %v2395_v54 = vld [vmem:[%s2626_s6 + $0xa8] ss:$28 sps:$4 sm:$0xff]   ;;  %v2396_v56 = vld [vmem:[%s2626_s6 + $0xb0] ss:$28 sps:$4 sm:$0xff]   ;;  %v2407_v58 = vld [vmem:[%s2986_s1 + $0x1b8] sm:$0xff]  }
  0x1f   : > { %2047 = vmatpush3.bf16.msra.mxu1 %v2354_v19  ;;  %1984 = vmatprep.subr.bf16.mxu0 %v2355_v20  ;;  %v2401_v60 = vld [vmem:[%s2626_s6 + $0xec] ss:$28 sps:$4 sm:$0xff]   ;;  %v2414_v61 = vld [vmem:[%s2986_s1 + $0x150] sm:$0xff]   ;;  %v2403_v1 = vld [vmem:[%s2626_s6 + $0xe0] ss:$28 sps:$4 sm:$0xff]  }
  0x20   : > { %2048 = vmatprep.subr.bf16.mxu1 %v2356_v21  ;;  %v2415_v62 = vld [vmem:[%s2986_s1 + $0x1b0] sm:$0xff]   ;;  %v2417_v0 = vld [vmem:[%s2986_s1 + $0x1a8] sm:$0xff]   ;;  %v2408_v3 = vld [vmem:[%s2626_s6 + $0x11c] ss:$28 sps:$4 sm:$0xff]  }
  0x21   : > { %v2416_v63 = vld [vmem:[%s2986_s1 + $0x110] sm:$0xff]   ;;  %v2404_v2 = vld [vmem:[%s2626_s6 + $0xe8] ss:$28 sps:$4 sm:$0xff]   ;;  %v2427_v8 = vld [vmem:[%s2986_s1 + $0x198] sm:$0xff]  }
  0x22   : > { %1985 = vmatpush3.bf16.msra.mxu0 %v2357_v22  ;;  %v2410_v4 = vld [vmem:[%s2626_s6 + $0x124] ss:$28 sps:$4 sm:$0xff]   ;;  %v2424_v5 = vld [vmem:[%s2986_s1 + $0x148] sm:$0xff]   ;;  %v2412_v9 = vld [vmem:[%s2626_s6 + $0x118] ss:$28 sps:$4 sm:$0xff]  }
  0x23   : > { %2049 = vmatpush3.bf16.msra.mxu1 %v2358_v23  ;;  %1986 = vmatprep.subr.bf16.mxu0 %v2359_v24  ;;  %v2425_v6 = vld [vmem:[%s2986_s1 + $0x1a0] sm:$0xff]   ;;  %v2426_v7 = vld [vmem:[%s2986_s1 + $0x108] sm:$0xff]   ;;  %v2418_v11 = vld [vmem:[%s2626_s6 + $0x154] ss:$28 sps:$4 sm:$0xff]  }
  0x24   : > { %2050 = vmatprep.subr.bf16.mxu1 %v2360_v25  ;;  %v2413_v10 = vld [vmem:[%s2626_s6 + $0x120] ss:$28 sps:$4 sm:$0xff]   ;;  %v2435_v14 = vld [vmem:[%s2986_s1 + $0x190] sm:$0xff]   ;;  %v2437_v16 = vld [vmem:[%s2986_s1 + $0x188] sm:$0xff]  }
  0x25   : > { %v2420_v12 = vld [vmem:[%s2626_s6 + $0x15c] ss:$28 sps:$4 sm:$0xff]   ;;  %v2434_v13 = vld [vmem:[%s2986_s1 + $0x140] sm:$0xff]   ;;  %v2422_v17 = vld [vmem:[%s2626_s6 + $0x150] ss:$28 sps:$4 sm:$0xff]  }
  0x26   : > { %1987 = vmatpush3.bf16.msra.mxu0 %v2361_v26  ;;  %v2436_v15 = vld [vmem:[%s2986_s1 + $0x100] sm:$0xff]   ;;  %v2423_v18 = vld [vmem:[%s2626_s6 + $0x158] ss:$28 sps:$4 sm:$0xff]   ;;  %v2428_v19 = vld [vmem:[%s2626_s6 + $0x18c] ss:$28 sps:$4 sm:$0xff]  }
  0x27   : > { %2051 = vmatpush3.bf16.msra.mxu1 %v2362_v27  ;;  %1988 = vmatprep.subr.bf16.mxu0 %v2363_v28  ;;  %v2430_v20 = vld [vmem:[%s2626_s6 + $0x194] ss:$28 sps:$4 sm:$0xff]   ;;  %v2441_v21 = vld [vmem:[%s2986_s1 + $0x180] sm:$0xff]   ;;  %v2444_v28 = vld [vmem:[%s2626_s6 + $0x4c] ss:$28 sps:$4 sm:$0xff]  }
  0x28   : > { %2052 = vmatprep.subr.bf16.mxu1 %v2364_v29  ;;  %v2432_v22 = vld [vmem:[%s2626_s6 + $0x188] ss:$28 sps:$4 sm:$0xff]   ;;  %v2433_v23 = vld [vmem:[%s2626_s6 + $0x190] ss:$28 sps:$4 sm:$0xff]   ;;  %v2442_v25 = vld [vmem:[%s2626_s6 + $0x18] ss:$28 sps:$4 sm:$0xff]  }
  0x29   : > { %v2440_v24 = vld [vmem:[%s2626_s6 + $0x14] ss:$28 sps:$4 sm:$0xff]   ;;  %v2450_v29 = vld [vmem:[%s2626_s6 + $0x88] ss:$28 sps:$4 sm:$0xff]   ;;  %v2452_v35 = vld [vmem:[%s2626_s6 + $0xbc] ss:$28 sps:$4 sm:$0xff]  }
  0x2a   : > { %1989 = vmatpush3.bf16.msra.mxu0 %v2365_v30  ;;  %v2438_v26 = vld [vmem:[%s2626_s6 + $0x10] ss:$28 sps:$4 sm:$0xff]   ;;  %v2446_v30 = vld [vmem:[%s2626_s6 + $0x48] ss:$28 sps:$4 sm:$0xff]   ;;  %v2458_v33 = vld [vmem:[%s2626_s6 + $0xf8] ss:$28 sps:$4 sm:$0xff]  }
  0x2b   : > { %2053 = vmatpush3.bf16.msra.mxu1 %v2366_v31  ;;  %2102 = vmatprep.subr.bf16.mxu0 %v2373_v36  ;;  %v2443_v27 = vld [vmem:[%s2626_s6 + $0x50] ss:$28 sps:$4 sm:$0xff]   ;;  %v2447_v31 = vld [vmem:[%s2626_s6 + $0x84] ss:$28 sps:$4 sm:$0xff]  }
  0x2c   : > { %2214 = vmatprep.subr.bf16.mxu1 %v2407_v58  ;;  %v2459_v36 = vld [vmem:[%s2626_s6 + $0x130] ss:$28 sps:$4 sm:$0xff]  }
  0x2d   : > { %1038 = vmatmul.mubr.bf16.vlgmr.msra.gmra.mxu0 %v2367_v32  ;;  %v2451_v32 = vld [vmem:[%s2626_s6 + $0xc0] ss:$28 sps:$4 sm:$0xff]  }
  0x2e   : > { %1135 = vmatmul.mubr.bf16.vlgmr.msra.gmra.mxu1 %v2370_v34  ;;  %2103 = vmatpush3.bf16.msra.mxu0 %v2374_v37  ;;  %v2449_v34 = vld [vmem:[%s2626_s6 + $0x80] ss:$28 sps:$4 sm:$0xff]   ;;  %v2466_v37 = vld [vmem:[%s2626_s6 + $0x168] ss:$28 sps:$4 sm:$0xff]  }
  0x2f   : > { %1045 = vmatprep.mubr.bf16.mxu0 %v2375_v38  ;;  %1142 = vmatprep.mubr.bf16.mxu1 %v2377_v39  ;;  %v2454_v38 = vld [vmem:[%s2626_s6 + $0xb8] ss:$28 sps:$4 sm:$0xff]  }
  0x30   : > { %2104 = vmatprep.subr.bf16.mxu0 %v2381_v42  ;;  %2215 = vmatpush3.bf16.msra.mxu1 %v2407_v58  ;;  %v2455_v39 = vld [vmem:[%s2626_s6 + $0xf4] ss:$28 sps:$4 sm:$0xff]   ;;  %v2460_v42 = vld [vmem:[%s2626_s6 + $0x12c] ss:$28 sps:$4 sm:$0xff]  }
  0x31   : > { %2216 = vmatprep.subr.bf16.mxu1 %v2415_v62 }
  0x32   : > { %2105 = vmatpush3.bf16.msra.mxu0 %v2382_v43  ;;  %v2462_v43 = vld [vmem:[%s2626_s6 + $0x128] ss:$28 sps:$4 sm:$0xff]  }
  0x33   : > { %2106 = vmatprep.subr.bf16.mxu0 %v2389_v46  ;;  %v2468_v46 = vld [vmem:[%s2626_s6 + $0x19c] ss:$28 sps:$4 sm:$0xff]  }
  0x34   : > { %2217 = vmatpush3.bf16.msra.mxu1 %v2415_v62 }
  0x35   : > { %1046 = vmatmul.mubr.bf16.gmra.mxu0 %v2379_v40  ;;  %2218 = vmatprep.subr.bf16.mxu1 %v2417_v0  ;;  %v2467_v40 = vld [vmem:[%s2626_s6 + $0x1a0] ss:$28 sps:$4 sm:$0xff]  }
  0x36   : > { %1143 = vmatmul.mubr.bf16.gmra.mxu1 %v2380_v41  ;;  %1053 = vmatprep.mubr.bf16.mxu0 %v2383_v44  ;;  %v2457_v41 = vld [vmem:[%s2626_s6 + $0xf0] ss:$28 sps:$4 sm:$0xff]   ;;  %v2463_v44 = vld [vmem:[%s2626_s6 + $0x164] ss:$28 sps:$4 sm:$0xff]  }
  0x37   : > { %1150 = vmatprep.mubr.bf16.mxu1 %v2385_v45  ;;  %2107 = vmatpush3.bf16.msra.mxu0 %v2390_v47  ;;  %v2465_v45 = vld [vmem:[%s2626_s6 + $0x160] ss:$28 sps:$4 sm:$0xff]   ;;  %v2470_v47 = vld [vmem:[%s2626_s6 + $0x198] ss:$28 sps:$4 sm:$0xff]  }
  0x38   : > { %2108 = vmatprep.subr.bf16.mxu0 %v2397_v52  ;;  %2219 = vmatpush3.bf16.msra.mxu1 %v2417_v0  ;;  %v2475_v52 = vld [vmem:[%s2987_s2 + $0x18] sm:$0xff]  }
  0x39   : > { %2220 = vmatprep.subr.bf16.mxu1 %v2425_v6 }
  0x3b   : > { %2109 = vmatpush3.bf16.msra.mxu0 %v2398_v53  ;;  %v2476_v53 = vld [vmem:[%s2987_s2 + $0x10] sm:$0xff]  }
  0x3c   : > { %2110 = vmatprep.subr.bf16.mxu0 %v2405_v55  ;;  %2221 = vmatpush3.bf16.msra.mxu1 %v2425_v6  ;;  %v2478_v55 = vld [vmem:[%s2987_s2] sm:$0xff]   ;;  %v2804_v6 = vld [vmem:[%s2988_s3 + $0x30] sm:$0xff]  }
  0x3d   : > { %1054 = vmatmul.mubr.bf16.gmra.mxu0 %v2387_v48  ;;  %2222 = vmatprep.subr.bf16.mxu1 %v2427_v8  ;;  %v2471_v48 = vld [vmem:[%s2987_s2 + $0x38] sm:$0xff]  }
  0x3e   : > { %1151 = vmatmul.mubr.bf16.gmra.mxu1 %v2388_v49  ;;  %1061 = vmatprep.mubr.bf16.mxu0 %v2391_v50  ;;  %v2472_v49 = vld [vmem:[%s2987_s2 + $0x30] sm:$0xff]   ;;  %v2473_v50 = vld [vmem:[%s2987_s2 + $0x28] sm:$0xff]  }
  0x3f   : > { %1158 = vmatprep.mubr.bf16.mxu1 %v2393_v51  ;;  %2111 = vmatpush3.bf16.msra.mxu0 %v2406_v57  ;;  %v2474_v51 = vld [vmem:[%s2987_s2 + $0x20] sm:$0xff]  }
  0x40   : > { %2112 = vmatprep.subr.bf16.mxu0 %v2414_v61  ;;  %2223 = vmatpush3.bf16.msra.mxu1 %v2427_v8 }
  0x41   : > { %2224 = vmatprep.subr.bf16.mxu1 %v2435_v14 }
  0x43   : > { %2113 = vmatpush3.bf16.msra.mxu0 %v2416_v63 }
  0x44   : > { %2114 = vmatprep.subr.bf16.mxu0 %v2424_v5  ;;  %2225 = vmatpush3.bf16.msra.mxu1 %v2435_v14  ;;  %v2799_v5 = vld [vmem:[%s2988_s3 + $0x38] sm:$0xff]  }
  0x45   : > { %1062 = vmatmul.mubr.bf16.gmra.mxu0 %v2395_v54  ;;  %2226 = vmatprep.subr.bf16.mxu1 %v2437_v16  ;;  %v2477_v54 = vld [vmem:[%s2987_s2 + $0x8] sm:$0xff]  }
  0x46   : > { %1159 = vmatmul.mubr.bf16.gmra.mxu1 %v2396_v56  ;;  %1069 = vmatprep.mubr.bf16.mxu0 %v2399_v59 }
  0x47   : > { %1166 = vmatprep.mubr.bf16.mxu1 %v2401_v60  ;;  %2115 = vmatpush3.bf16.msra.mxu0 %v2426_v7 }
  0x48   : > { %2116 = vmatprep.subr.bf16.mxu0 %v2434_v13  ;;  %2227 = vmatpush3.bf16.msra.mxu1 %v2437_v16  ;;  %v2817_v13 = vld [vmem:[%s2988_s3 + $0x28] sm:$0xff]  }
  0x49   : > { %2228 = vmatprep.subr.bf16.mxu1 %v2441_v21 }
  0x4b   : > { %2117 = vmatpush3.bf16.msra.mxu0 %v2436_v15 }
  0x4c   : > { %2229 = vmatpush3.bf16.msra.mxu1 %v2441_v21  ;;  %2278 = vmatprep.subr.bf16.mxu0 %v2799_v5 }
  0x4d   : > { %1070 = vmatmul.mubr.bf16.gmra.mxu0 %v2403_v1  ;;  %2246 = vmatprep.subr.bf16.mxu1 %v2471_v48 }
  0x4e   : > { %1167 = vmatmul.mubr.bf16.gmra.mxu1 %v2404_v2  ;;  %1077 = vmatprep.mubr.bf16.mxu0 %v2408_v3 }
  0x4f   : > { %1174 = vmatprep.mubr.bf16.mxu1 %v2410_v4 }
  0x55   : > { %1078 = vmatmul.mubr.bf16.gmra.mxu0 %v2412_v9 }
  0x56   : > { %1175 = vmatmul.mubr.bf16.gmra.mxu1 %v2413_v10  ;;  %1085 = vmatprep.mubr.bf16.mxu0 %v2418_v11 }
  0x57   : > { %1182 = vmatprep.mubr.bf16.mxu1 %v2420_v12 }
  0x5d   : > { %1086 = vmatmul.mubr.bf16.gmra.mxu0 %v2422_v17 }
  0x5e   : > { %1183 = vmatmul.mubr.bf16.gmra.mxu1 %v2423_v18  ;;  %1093 = vmatprep.mubr.bf16.mxu0 %v2428_v19  ;;  %v2830_v19 = vld [vmem:[%s2988_s3 + $0x20] sm:$0xff]  }
  0x5f   : > { %1190 = vmatprep.mubr.bf16.mxu1 %v2430_v20 }
  0x65   : > { %1094 = vmatmul.mubr.bf16.gmra.mxu0 %v2432_v22 }
  0x66   : > { %1191 = vmatmul.mubr.bf16.gmra.mxu1 %v2433_v23  ;;  %1231 = vmatprep.mubr.bf16.mxu0 %v2440_v24 }
  0x67   : > { %2230 = vmatprep.mubr.bf16.mxu1 %v2442_v25 }
  0x6d   : > { %1232 = vmatmul.mubr.bf16.vlgmr.msra.gmra.mxu0 %v2438_v26  ;;  %v2841_v26 = vld [vmem:[%s2988_s3 + $0x18] sm:$0xff]  }
  0x6e   : > { %2231 = vmatmul.mubr.bf16.vlgmr.msra.gmra.mxu1 %v2443_v27  ;;  %1239 = vmatprep.mubr.bf16.mxu0 %v2444_v28 }
  0x6f   : > { %2234 = vmatprep.mubr.bf16.mxu1 %v2450_v29  ;;  %2247 = vmatpush3.bf16.msra.mxu1 %v2471_v48 }
  0x70   : > { %2248 = vmatprep.subr.bf16.mxu1 %v2472_v49  ;;  %2279 = vmatpush3.bf16.msra.mxu0 %v2799_v5 }
  0x71   : > { %2280 = vmatprep.subr.bf16.mxu0 %v2804_v6 }
  0x73   : > { %2249 = vmatpush3.bf16.msra.mxu1 %v2472_v49 }
  0x74   : > { %2250 = vmatprep.subr.bf16.mxu1 %v2473_v50  ;;  %2281 = vmatpush3.bf16.msra.mxu0 %v2804_v6 }
  0x75   : > { %1240 = vmatmul.mubr.bf16.gmra.mxu0 %v2446_v30  ;;  %2282 = vmatprep.subr.bf16.mxu0 %v2817_v13 }
  0x76   : > { %1247 = vmatprep.mubr.bf16.mxu0 %v2447_v31  ;;  %2235 = vmatmul.mubr.bf16.gmra.mxu1 %v2451_v32 }
  0x77   : > { %2238 = vmatprep.mubr.bf16.mxu1 %v2458_v33  ;;  %2251 = vmatpush3.bf16.msra.mxu1 %v2473_v50 }
  0x78   : > { %2252 = vmatprep.subr.bf16.mxu1 %v2474_v51  ;;  %2283 = vmatpush3.bf16.msra.mxu0 %v2817_v13 }
  0x79   : > { %2284 = vmatprep.subr.bf16.mxu0 %v2830_v19 }
  0x7b   : > { %2253 = vmatpush3.bf16.msra.mxu1 %v2474_v51 }
  0x7c   : > { %2254 = vmatprep.subr.bf16.mxu1 %v2475_v52  ;;  %2285 = vmatpush3.bf16.msra.mxu0 %v2830_v19 }
  0x7d   : > { %1248 = vmatmul.mubr.bf16.gmra.mxu0 %v2449_v34  ;;  %2286 = vmatprep.subr.bf16.mxu0 %v2841_v26 }
  0x7e   : > { %1255 = vmatprep.mubr.bf16.mxu0 %v2452_v35  ;;  %2239 = vmatmul.mubr.bf16.gmra.mxu1 %v2459_v36 }
  0x7f   : > { %2242 = vmatprep.mubr.bf16.mxu1 %v2466_v37  ;;  %2255 = vmatpush3.bf16.msra.mxu1 %v2475_v52 }
  0x80   : > { %2256 = vmatprep.subr.bf16.mxu1 %v2476_v53  ;;  %2287 = vmatpush3.bf16.msra.mxu0 %v2841_v26 }
  0x83   : > { %2257 = vmatpush3.bf16.msra.mxu1 %v2476_v53 }
  0x84   : > { %2258 = vmatprep.subr.bf16.mxu1 %v2477_v54 }
  0x85   : > { %1256 = vmatmul.mubr.bf16.gmra.mxu0 %v2454_v38 }
  0x86   : > { %1263 = vmatprep.mubr.bf16.mxu0 %v2455_v39  ;;  %2243 = vmatmul.mubr.bf16.gmra.mxu1 %v2467_v40 }
  0x87   : > { %2259 = vmatpush3.bf16.msra.mxu1 %v2477_v54 }
  0x88   : > { %2260 = vmatprep.subr.bf16.mxu1 %v2478_v55 }
  0x8b   : > { %2261 = vmatpush3.bf16.msra.mxu1 %v2478_v55 }
  0x8c   : > { %2310 = vmatprep.subr.bf16.mxu1 %v2799_v5 }
  0x8d   : > { %1264 = vmatmul.mubr.bf16.gmra.mxu0 %v2457_v41 }
  0x8e   : > { %1271 = vmatprep.mubr.bf16.mxu0 %v2460_v42 }
  0x95   : > { %1272 = vmatmul.mubr.bf16.gmra.mxu0 %v2462_v43 }
  0x96   : > { %1279 = vmatprep.mubr.bf16.mxu0 %v2463_v44 }
  0x9d   : > { %1280 = vmatmul.mubr.bf16.gmra.mxu0 %v2465_v45 }
  0x9e   : > { %1287 = vmatprep.mubr.bf16.mxu0 %v2468_v46 }
  0xa5   : > { %1288 = vmatmul.mubr.bf16.gmra.mxu0 %v2470_v47 }
  0xed   : > { %v1990_v56 = vpop.f32.mrf.mxu0 }
  0xee   : > { %v2054_v57 = vpop.f32.mrf.mxu1 }
  0xef   : > { %v1991_v58 = vpop.f32.mrf.mxu0 }
  0xf0   : > { %v1992_v59 = vadd.f32 %v1991_v58, %v1990_v56  ;;  %v2055_v60 = vpop.f32.mrf.mxu1 }
  0xf1   : > { %v2056_v61 = vadd.f32 %v2055_v60, %v2054_v57  ;;  %v2786_v62 = vpop.f32.mrf.mxu0 }
  0xf2   : > { %v2788_v63 = vpop.f32.mrf.mxu1 }
  0xf3   : > { %v2790_v0 = vadd.f32 %v2056_v61, %v1992_v59  ;;  %v2792_v1 = vpop.f32.mrf.mxu0 }
  0xf4   : > { %v2794_v2 = vpop.f32.mrf.mxu1 }
  0xf5   : > { %v1996_v3 = vpop.f32.mrf.mxu0 }
  0xf6   : > { %v2060_v4 = vpop.f32.mrf.mxu1 }
  0xf7   : > { %v1997_v7 = vpop.f32.mrf.mxu0 }
  0xf8   : > { %v1998_v8 = vadd.f32 %v1997_v7, %v1996_v3  ;;  %v2061_v9 = vpop.f32.mrf.mxu1 }
  0xf9   : > { %v2062_v10 = vadd.f32 %v2061_v9, %v2060_v4  ;;  %v2808_v11 = vpop.f32.mrf.mxu0 }
  0xfa   : > { %v2811_v12 = vpop.f32.mrf.mxu1 }
  0xfb   : > { %v2819_v14 = vadd.f32 %v2062_v10, %v1998_v8  ;;  %v2821_v15 = vpop.f32.mrf.mxu0 }
  0xfc   : > { %v2823_v16 = vpop.f32.mrf.mxu1 }
  0xfd   : > { %v2002_v17 = vpop.f32.mrf.mxu0 }
  0xfe   : > { %v2066_v18 = vpop.f32.mrf.mxu1 }
  0xff   : > { %v2003_v20 = vpop.f32.mrf.mxu0 }
 0x100   : > { %v2004_v21 = vadd.f32 %v2003_v20, %v2002_v17  ;;  %v2067_v22 = vpop.f32.mrf.mxu1 }
 0x101   : > { %v2068_v23 = vadd.f32 %v2067_v22, %v2066_v18  ;;  %v2832_v24 = vpop.f32.mrf.mxu0 }
 0x102   : > { %v2835_v25 = vpop.f32.mrf.mxu1 }
 0x103   : > { %v2843_v27 = vadd.f32 %v2068_v23, %v2004_v21  ;;  %v2845_v28 = vpop.f32.mrf.mxu0 }
 0x104   : > { %v2847_v29 = vpop.f32.mrf.mxu1 }
 0x105   : > { %v2008_v30 = vpop.f32.mrf.mxu0 }
 0x106   : > { %v2072_v31 = vpop.f32.mrf.mxu1 }
 0x107   : > { %v2009_v32 = vpop.f32.mrf.mxu0 }
 0x108   : > { %v2010_v33 = vadd.f32 %v2009_v32, %v2008_v30  ;;  %v2073_v34 = vpop.f32.mrf.mxu1 }
 0x109   : > { %v2074_v35 = vadd.f32 %v2073_v34, %v2072_v31  ;;  %v2851_v36 = vpop.f32.mrf.mxu0 }
 0x10a   : > { %v2854_v37 = vpop.f32.mrf.mxu1 }
 0x10b   : > { %v2856_v38 = vadd.f32 %v2074_v35, %v2010_v33  ;;  %v2858_v39 = vpop.f32.mrf.mxu0 }
 0x10c   : > { %v2860_v40 = vpop.f32.mrf.mxu1 }
 0x10d   : > { %v2014_v41 = vpop.f32.mrf.mxu0 }
 0x10e   : > { %v2078_v42 = vpop.f32.mrf.mxu1 }
 0x10f   : > { %v2015_v43 = vpop.f32.mrf.mxu0 }
 0x110   : > { %v2016_v44 = vadd.f32 %v2015_v43, %v2014_v41  ;;  %v2079_v45 = vpop.f32.mrf.mxu1 }
 0x111   : > { %v2080_v46 = vadd.f32 %v2079_v45, %v2078_v42  ;;  %v2862_v47 = vpop.f32.mrf.mxu0 }
 0x112   : > { %v2864_v48 = vpop.f32.mrf.mxu1 }
 0x113   : > { %v2866_v49 = vadd.f32 %v2080_v46, %v2016_v44  ;;  %v2868_v50 = vpop.f32.mrf.mxu0 }
 0x114   : > { %v2870_v51 = vpop.f32.mrf.mxu1 }
 0x115   : > { %v2020_v52 = vpop.f32.mrf.mxu0 }
 0x116   : > { %v2084_v53 = vpop.f32.mrf.mxu1 }
 0x117   : > { %v2021_v54 = vpop.f32.mrf.mxu0 }
 0x118   : > { %v2022_v55 = vadd.f32 %v2021_v54, %v2020_v52  ;;  %v2085_v56 = vpop.f32.mrf.mxu1  ;;  %v1995_v54 = vadd.f32 %v2792_v1, %v2786_v62  ;;  %v2001_v62 = vadd.f32 %v2821_v15, %v2808_v11  ;;  %v2071_v15 = vadd.f32 %v2847_v29, %v2835_v25 }
 0x119   : > { %v2086_v57 = vadd.f32 %v2085_v56, %v2084_v53  ;;  %v2872_v58 = vpop.f32.mrf.mxu0  ;;  %v2013_v25 = vadd.f32 %v2858_v39, %v2851_v36  ;;  %v2077_v29 = vadd.f32 %v2860_v40, %v2854_v37 }
 0x11a   : > { %v2874_v59 = vpop.f32.mrf.mxu1 }
 0x11b   : > { %v2876_v60 = vadd.f32 %v2086_v57, %v2022_v55  ;;  %v2878_v61 = vpop.f32.mrf.mxu0  ;;  %v2059_v55 = vadd.f32 %v2794_v2, %v2788_v63  ;;  %v2065_v63 = vadd.f32 %v2823_v16, %v2811_v12  ;;  %v2007_v12 = vadd.f32 %v2845_v28, %v2832_v24 }
 0x11c   : > { %v2880_v3 = vpop.f32.mrf.mxu1 }
 0x11d   : > { %v2026_v4 = vpop.f32.mrf.mxu0 }
 0x11e   : > { %v2090_v7 = vpop.f32.mrf.mxu1 }
 0x11f   : > { %v2027_v8 = vpop.f32.mrf.mxu0 }
 0x120   : > { %v2028_v9 = vadd.f32 %v2027_v8, %v2026_v4  ;;  %v2091_v10 = vpop.f32.mrf.mxu1 }
 0x121   : > { %v2092_v17 = vadd.f32 %v2091_v10, %v2090_v7  ;;  %v2882_v18 = vpop.f32.mrf.mxu0  ;;  %v1140_v10 = vadd.f32 %v2059_v55, %v1995_v54 }
 0x122   : > { %v2884_v20 = vpop.f32.mrf.mxu1 }
 0x123   : > { %v2886_v21 = vadd.f32 %v2092_v17, %v2028_v9  ;;  %v2888_v22 = vpop.f32.mrf.mxu0 }
 0x124   : > { %v2890_v23 = vpop.f32.mrf.mxu1 }
 0x125   : > { %v2032_v30 = vpop.f32.mrf.mxu0 }
 0x126   : > { %v2096_v31 = vpop.f32.mrf.mxu1 }
 0x127   : > { %v2033_v32 = vpop.f32.mrf.mxu0 }
 0x128   : > { %v2034_v33 = vadd.f32 %v2033_v32, %v2032_v30  ;;  %v2097_v34 = vpop.f32.mrf.mxu1 }
 0x129   : > { %v2098_v35 = vadd.f32 %v2097_v34, %v2096_v31  ;;  %v2892_v41 = vpop.f32.mrf.mxu0 }
 0x12a   : > { %v2894_v42 = vpop.f32.mrf.mxu1 }
 0x12b   : > { %v2896_v43 = vadd.f32 %v2098_v35, %v2034_v33  ;;  %v2898_v44 = vpop.f32.mrf.mxu0 }
 0x12c   : > { %v2900_v45 = vpop.f32.mrf.mxu1 }
 0x12d   : > { %v2118_v46 = vpop.f32.mrf.mxu0 }
 0x12e   : > { %v2232_v52 = vpop.f32.mrf.mxu1 }
 0x12f   : > { %v2119_v53 = vpop.f32.mrf.mxu0 }
 0x130   : > { %v2120_v56 = vadd.f32 %v2119_v53, %v2118_v46  ;;  %v1330_v57 = vpop.f32.mrf.mxu1 }
 0x131   : > { %v2121_v4 = vpop.f32.mrf.mxu0 }
 0x132   : > { %v1234_v7 = vadd.f32 %v2120_v56, %v2790_v0  ;;  %v2233_v8 = vpop.f32.mrf.mxu1  ;;  %v1148_v56 = vadd.f32 %v2065_v63, %v2001_v62  ;;  %v1156_v63 = vadd.f32 %v2071_v15, %v2007_v12 }
 0x133   : > { %v2122_v9 = vpop.f32.mrf.mxu0 }
 0x134   : > { %v2123_v17 = vadd.f32 %v2122_v9, %v2121_v4  ;;  %v1333_v31 = vpop.f32.mrf.mxu1  ;;  %v1331_v32 = vadd.f32 %v1330_v57, %v1234_v7 }
 0x135   : > { %v2124_v30 = vpop.f32.mrf.mxu0 }
 0x136   : > { %v1237_v33 = vadd.f32 %v2123_v17, %v1140_v10  ;;  %v2236_v46 = vpop.f32.mrf.mxu1  ;;  %v1393_v0 = vmax.f32 %v1331_v32, 0.0 }
 0x137   : > { %v2125_v34 = vpop.f32.mrf.mxu0 }
 0x138   : > { %v2126_v1 = vadd.f32 %v2125_v34, %v2124_v30  ;;  %v1334_v2 = vadd.f32 %v1333_v31, %v1237_v33  ;;  %v1346_v9 = vpop.f32.mrf.mxu1 }
 0x139   : > { %v2127_v35 = vpop.f32.mrf.mxu0 }
 0x13a   : > { %v1242_v53 = vadd.f32 %v2126_v1, %v2819_v14  ;;  %v1394_v54 = vmax.f32 %v1334_v2, 0.0  ;;  %v2237_v31 = vpop.f32.mrf.mxu1 }
 0x13b   : > { %v2128_v55 = vpop.f32.mrf.mxu0 }
 0x13c   : > { %v1409_v4 = vpack.c.bf16 %v1394_v54, %v1393_v0  ;;  %v2129_v57 = vadd.f32 %v2128_v55, %v2127_v35  ;;  %v1339_v10 = vadd.f32 %v2232_v52, %v1242_v53  ;;  %v1349_v35 = vpop.f32.mrf.mxu1 }
 0x13d   : > { %v2130_v7 = vpop.f32.mrf.mxu0 }
 0x13e   : > { %v1245_v17 = vadd.f32 %v2129_v57, %v1148_v56  ;;  %2262 = vmatprep.mubr.bf16.mxu1 %v1409_v4  ;;  %v1395_v32 = vmax.f32 %v1339_v10, 0.0  ;;  %v2240_v54 = vpop.f32.mrf.mxu1 }
 0x13f   : > { %v2131_v11 = vpop.f32.mrf.mxu0 }
 0x140   : > { %v1342_v16 = vadd.f32 %v2233_v8, %v1245_v17  ;;  %v2132_v30 = vadd.f32 %v2131_v11, %v2130_v7  ;;  %v1362_v37 = vpop.f32.mrf.mxu1  ;;  %v2083_v17 = vadd.f32 %v2870_v51, %v2864_v48 }
 0x141   : > { %v2133_v14 = vpop.f32.mrf.mxu0 }
 0x142   : > { %v1396_v33 = vmax.f32 %v1342_v16, 0.0  ;;  %v1250_v34 = vadd.f32 %v2132_v30, %v2843_v27  ;;  %v2241_v15 = vpop.f32.mrf.mxu1 }
 0x143   : > { %v2134_v62 = vpop.f32.mrf.mxu0 }
 0x144   : > { %v1410_v52 = vpack.c.bf16 %v1396_v33, %v1395_v32  ;;  %v2135_v1 = vadd.f32 %v2134_v62, %v2133_v14  ;;  %v1347_v0 = vadd.f32 %v1346_v9, %v1250_v34  ;;  %v1365_v48 = vpop.f32.mrf.mxu1  ;;  %v2025_v34 = vadd.f32 %v2878_v61, %v2872_v58 }
 0x145   : > { %v2136_v2 = vpop.f32.mrf.mxu0  ;;  %v2095_v61 = vadd.f32 %v2890_v23, %v2884_v20  ;;  %v2037_v20 = vadd.f32 %v2898_v44, %v2892_v41  ;;  %v2101_v23 = vadd.f32 %v2900_v45, %v2894_v42  ;;  %v2484_v42 = vld [vmem:[%s2988_s3 + $0x10] sm:$0xff]   ;;  %v2486_v45 = vld [vmem:[%s2988_s3] sm:$0xff]  }
 0x146   : > { %2263 = vmatmul.mubr.bf16.vlgmr.msra.gmra.mxu1 %v1410_v52  ;;  %v1253_v24 = vadd.f32 %v2135_v1, %v1156_v63  ;;  %v1397_v55 = vmax.f32 %v1347_v0, 0.0  ;;  %v2244_v52 = vpop.f32.mrf.mxu1  ;;  %2288 = vmatprep.subr.bf16.mxu0 %v2484_v42 }
 0x147   : > { %v2137_v28 = vpop.f32.mrf.mxu0  ;;  %2318 = vmatpush3.bf16.msra.mxu1 %v2799_v5  ;;  %v1164_v5 = vadd.f32 %v2077_v29, %v2013_v25  ;;  %2289 = vmatpush3.bf16.msra.mxu0 %v2484_v42 }
 0x148   : > { %v2138_v8 = vadd.f32 %v2137_v28, %v2136_v2  ;;  %v1350_v27 = vadd.f32 %v1349_v35, %v1253_v24  ;;  %2311 = vmatprep.subr.bf16.mxu1 %v2804_v6 }
 0x149   : > { %v2139_v53 = vpop.f32.mrf.mxu0 }
 0x14a   : > { %v1258_v56 = vadd.f32 %v2138_v8, %v2856_v38  ;;  %v1398_v4 = vmax.f32 %v1350_v27, 0.0  ;;  %v2019_v38 = vadd.f32 %v2868_v50, %v2862_v47 }
 0x14b   : > { %v2140_v57 = vpop.f32.mrf.mxu0  ;;  %2319 = vmatpush3.bf16.msra.mxu1 %v2804_v6 }
 0x14c   : > { %v1411_v7 = vpack.c.bf16 %v1398_v4, %v1397_v55  ;;  %v2141_v9 = vadd.f32 %v2140_v57, %v2139_v53  ;;  %2312 = vmatprep.subr.bf16.mxu1 %v2817_v13  ;;  %v1355_v39 = vadd.f32 %v2236_v46, %v1258_v56 }
 0x14d   : > { %v2142_v36 = vpop.f32.mrf.mxu0 }
 0x14e   : > { %v1261_v40 = vadd.f32 %v2141_v9, %v1164_v5  ;;  %2266 = vmatprep.mubr.bf16.mxu1 %v1411_v7  ;;  %v1399_v16 = vmax.f32 %v1355_v39, 0.0 }
 0x14f   : > { %v2143_v10 = vpop.f32.mrf.mxu0  ;;  %2320 = vmatpush3.bf16.msra.mxu1 %v2817_v13  ;;  %v1172_v13 = vadd.f32 %v2083_v17, %v2019_v38 }
 0x150   : > { %v1358_v6 = vadd.f32 %v2237_v31, %v1261_v40  ;;  %v2144_v11 = vadd.f32 %v2143_v10, %v2142_v36  ;;  %2313 = vmatprep.subr.bf16.mxu1 %v2830_v19 }
 0x151   : > { %v2145_v12 = vpop.f32.mrf.mxu0 }
 0x152   : > { %v1400_v30 = vmax.f32 %v1358_v6, 0.0  ;;  %v1266_v46 = vadd.f32 %v2144_v11, %v2866_v49  ;;  %v2089_v49 = vadd.f32 %v2880_v3, %v2874_v59  ;;  %v2031_v59 = vadd.f32 %v2888_v22, %v2882_v18 }
 0x153   : > { %v2146_v14 = vpop.f32.mrf.mxu0  ;;  %2321 = vmatpush3.bf16.msra.mxu1 %v2830_v19 }
 0x154   : > { %v2147_v32 = vadd.f32 %v2146_v14, %v2145_v12  ;;  %v1412_v33 = vpack.c.bf16 %v1400_v30, %v1399_v16  ;;  %2314 = vmatprep.subr.bf16.mxu1 %v2841_v26  ;;  %v1363_v50 = vadd.f32 %v1362_v37, %v1266_v46  ;;  %v1180_v24 = vadd.f32 %v2089_v49, %v2025_v34 }
 0x155   : > { %v2148_v47 = vpop.f32.mrf.mxu0  ;;  %v1188_v7 = vadd.f32 %v2095_v61, %v2031_v59  ;;  %v1196_v12 = vadd.f32 %v2101_v23, %v2037_v20 }
 0x156   : > { %2267 = vmatmul.mubr.bf16.gmra.mxu1 %v1412_v33  ;;  %v1269_v51 = vadd.f32 %v2147_v32, %v1172_v13  ;;  %v1401_v1 = vmax.f32 %v1363_v50, 0.0 }
 0x157   : > { %v2149_v31 = vpop.f32.mrf.mxu0  ;;  %2322 = vmatpush3.bf16.msra.mxu1 %v2841_v26  ;;  %v1378_v26 = vpop.f32.mrf.mxu1 }
 0x158   : > { %v2150_v19 = vadd.f32 %v2149_v31, %v2148_v47  ;;  %v1366_v62 = vadd.f32 %v1365_v48, %v1269_v51  ;;  %2315 = vmatprep.subr.bf16.mxu1 %v2484_v42 }
 0x159   : > { %v2151_v63 = vpop.f32.mrf.mxu0  ;;  %v2245_v55 = vpop.f32.mrf.mxu1 }
 0x15a   : > { %v1274_v2 = vadd.f32 %v2150_v19, %v2876_v60  ;;  %v1402_v35 = vmax.f32 %v1366_v62, 0.0 }
 0x15b   : > { %v2152_v0 = vpop.f32.mrf.mxu0  ;;  %v1381_v37 = vpop.f32.mrf.mxu1  ;;  %2323 = vmatpush3.bf16.msra.mxu1 %v2484_v42 }
 0x15c   : > { %v1413_v28 = vpack.c.bf16 %v1402_v35, %v1401_v1  ;;  %v2153_v25 = vadd.f32 %v2152_v0, %v2151_v63  ;;  %v1371_v8 = vadd.f32 %v2240_v54, %v1274_v2 }
 0x15d   : > { %v2154_v29 = vpop.f32.mrf.mxu0 }
 0x15e   : > { %v1277_v27 = vadd.f32 %v2153_v25, %v1180_v24  ;;  %2270 = vmatprep.mubr.bf16.mxu1 %v1413_v28  ;;  %v1403_v56 = vmax.f32 %v1371_v8, 0.0 }
 0x15f   : > { %v2155_v58 = vpop.f32.mrf.mxu0 }
 0x160   : > { %v1374_v3 = vadd.f32 %v2241_v15, %v1277_v27  ;;  %v2156_v53 = vadd.f32 %v2155_v58, %v2154_v29 }
 0x161   : > { %v2157_v60 = vpop.f32.mrf.mxu0 }
 0x162   : > { %v1404_v4 = vmax.f32 %v1374_v3, 0.0  ;;  %v1282_v57 = vadd.f32 %v2156_v53, %v2886_v21 }
 0x163   : > { %v2158_v5 = vpop.f32.mrf.mxu0 }
 0x164   : > { %v2159_v54 = vadd.f32 %v2158_v5, %v2157_v60  ;;  %v1414_v9 = vpack.c.bf16 %v1404_v4, %v1403_v56  ;;  %v1379_v39 = vadd.f32 %v1378_v26, %v1282_v57 }
 0x165   : > { %v2160_v36 = vpop.f32.mrf.mxu0 }
 0x166   : > { %2271 = vmatmul.mubr.bf16.gmra.mxu1 %v1414_v9  ;;  %v1285_v18 = vadd.f32 %v2159_v54, %v1188_v7  ;;  %v1405_v21 = vmax.f32 %v1379_v39, 0.0 }
 0x167   : > { %v2161_v22 = vpop.f32.mrf.mxu0 }
 0x168   : > { %v2162_v40 = vadd.f32 %v2161_v22, %v2160_v36  ;;  %v1382_v10 = vadd.f32 %v1381_v37, %v1285_v18 }
 0x169   : > { %v2163_v38 = vpop.f32.mrf.mxu0 }
 0x16a   : > { %v1290_v17 = vadd.f32 %v2162_v40, %v2896_v43  ;;  %v1406_v6 = vmax.f32 %v1382_v10, 0.0  ;;  %v2485_v43 = vld [vmem:[%s2988_s3 + $0x8] sm:$0xff]  }
 0x16b   : > { %v2164_v11 = vpop.f32.mrf.mxu0  ;;  %2290 = vmatprep.subr.bf16.mxu0 %v2485_v43  ;;  %2316 = vmatprep.subr.bf16.mxu1 %v2485_v43 }
 0x16c   : > { %v1415_v15 = vpack.c.bf16 %v1406_v6, %v1405_v21  ;;  %v2165_v16 = vadd.f32 %v2164_v11, %v2163_v38  ;;  %v1387_v30 = vadd.f32 %v2244_v52, %v1290_v17  ;;  %2291 = vmatpush3.bf16.msra.mxu0 %v2485_v43  ;;  %2324 = vmatpush3.bf16.msra.mxu1 %v2485_v43 }
 0x16d   : > { %2292 = vmatprep.subr.bf16.mxu0 %v2486_v45  ;;  %2317 = vmatprep.subr.bf16.mxu1 %v2486_v45 }
 0x16e   : > { %v1293_v46 = vadd.f32 %v2165_v16, %v1196_v12  ;;  %2274 = vmatprep.mubr.bf16.mxu1 %v1415_v15  ;;  %v1407_v13 = vmax.f32 %v1387_v30, 0.0 }
 0x170   : > { %v1390_v14 = vadd.f32 %v2245_v55, %v1293_v46  ;;  %2293 = vmatpush3.bf16.msra.mxu0 %v2486_v45  ;;  %2325 = vmatpush3.bf16.msra.mxu1 %v2486_v45 }
 0x172   : > { %v1408_v41 = vmax.f32 %v1390_v14, 0.0 }
 0x174   : > { %v1416_v44 = vpack.c.bf16 %v1408_v41, %v1407_v13 }
 0x176   : > { %2275 = vmatmul.mubr.bf16.gmra.mxu1 %v1416_v44 }
 0x206   : > { %v2264_v32 = vpop.f32.mrf.mxu1 }
 0x207   : > { %v1580_v34 = vmax.f32 %v2264_v32, 0.0 }
 0x208   : > { %v1515_v33 = vpop.f32.mrf.mxu1 }
 0x209   : > { %v1578_v51 = vmax.f32 %v1515_v33, 0.0 }
 0x20a   : > { %v2265_v47 = vpop.f32.mrf.mxu1 }
 0x20b   : > { %v1581_v48 = vmax.f32 %v2265_v47, 0.0 }
 0x20c   : > { %v1518_v50 = vpop.f32.mrf.mxu1 }
 0x20d   : > { %v1579_v31 = vmax.f32 %v1518_v50, 0.0  ;;  %v1595_v19 = vpack.c.bf16 %v1581_v48, %v1580_v34 }
 0x20f   : > { %v1594_v49 = vpack.c.bf16 %v1579_v31, %v1578_v51 }
 0x211   : > { %2294 = vmatprep.mubr.bf16.mxu0 %v1594_v49 }
 0x212   : > { %2295 = vmatmul.mubr.bf16.vlgmr.msra.gmra.mxu0 %v1595_v19 }
 0x216   : > { %v2268_v62 = vpop.f32.mrf.mxu1 }
 0x217   : > { %v1584_v24 = vmax.f32 %v2268_v62, 0.0 }
 0x218   : > { %v1531_v63 = vpop.f32.mrf.mxu1 }
 0x219   : > { %v1582_v35 = vmax.f32 %v1531_v63, 0.0 }
 0x21a   : > { %v2269_v52 = vpop.f32.mrf.mxu1 }
 0x21b   : > { %v1585_v1 = vmax.f32 %v2269_v52, 0.0 }
 0x21c   : > { %v1534_v2 = vpop.f32.mrf.mxu1 }
 0x21d   : > { %v1583_v0 = vmax.f32 %v1534_v2, 0.0  ;;  %v1597_v25 = vpack.c.bf16 %v1585_v1, %v1584_v24 }
 0x21f   : > { %v1596_v28 = vpack.c.bf16 %v1583_v0, %v1582_v35 }
 0x221   : > { %2298 = vmatprep.mubr.bf16.mxu0 %v1596_v28 }
 0x222   : > { %2299 = vmatmul.mubr.bf16.gmra.mxu0 %v1597_v25 }
 0x226   : > { %v2272_v29 = vpop.f32.mrf.mxu1 }
 0x227   : > { %v1588_v3 = vmax.f32 %v2272_v29, 0.0 }
 0x228   : > { %v1547_v26 = vpop.f32.mrf.mxu1 }
 0x229   : > { %v1586_v59 = vmax.f32 %v1547_v26, 0.0 }
 0x22a   : > { %v2273_v8 = vpop.f32.mrf.mxu1 }
 0x22b   : > { %v1589_v27 = vmax.f32 %v2273_v8, 0.0 }
 0x22c   : > { %v1550_v58 = vpop.f32.mrf.mxu1 }
 0x22d   : > { %v1587_v61 = vmax.f32 %v1550_v58, 0.0  ;;  %v1599_v60 = vpack.c.bf16 %v1589_v27, %v1588_v3 }
 0x22f   : > { %v1598_v53 = vpack.c.bf16 %v1587_v61, %v1586_v59 }
 0x231   : > { %2302 = vmatprep.mubr.bf16.mxu1 %v1598_v53 }
 0x232   : > { %2303 = vmatmul.mubr.bf16.vlgmr.msra.gmra.mxu1 %v1599_v60 }
 0x236   : > { %v2276_v55 = vpop.f32.mrf.mxu1 }
 0x237   : > { %v1592_v9 = vmax.f32 %v2276_v55, 0.0 }
 0x238   : > { %v1563_v56 = vpop.f32.mrf.mxu1 }
 0x239   : > { %v1590_v7 = vmax.f32 %v1563_v56, 0.0 }
 0x23a   : > { %v2277_v4 = vpop.f32.mrf.mxu1 }
 0x23b   : > { %v1593_v57 = vmax.f32 %v2277_v4, 0.0 }
 0x23c   : > { %v1566_v5 = vpop.f32.mrf.mxu1 }
 0x23d   : > { %v1591_v54 = vmax.f32 %v1566_v5, 0.0  ;;  %v1601_v37 = vpack.c.bf16 %v1593_v57, %v1592_v9 }
 0x23f   : > { %v1600_v36 = vpack.c.bf16 %v1591_v54, %v1590_v7 }
 0x241   : > { %2306 = vmatprep.mubr.bf16.mxu1 %v1600_v36 }
 0x242   : > { %2307 = vmatmul.mubr.bf16.gmra.mxu1 %v1601_v37 }
 0x2d2   : > { %v2296_v39 = vpop.f32.mrf.mxu0 }
 0x2d3   : > { %1765 = vst [vmem:[%s2964_s26 + $0x10] sm:$0xff] %v2296_v39 }
 0x2d4   : > { %v1700_v18 = vpop.f32.mrf.mxu0 }
 0x2d5   : > { %1763 = vst [vmem:[%s2964_s26] sm:$0xff] %v1700_v18 }
 0x2d6   : > { %v2297_v22 = vpop.f32.mrf.mxu0 }
 0x2d7   : > { %1766 = vst [vmem:[%s2964_s26 + $0x18] sm:$0xff] %v2297_v22 }
 0x2d8   : > { %v1703_v20 = vpop.f32.mrf.mxu0 }
 0x2d9   : > { %1764 = vst [vmem:[%s2964_s26 + $0x8] sm:$0xff] %v1703_v20 }
 0x2e2   : > { %v2300_v23 = vpop.f32.mrf.mxu0 }
 0x2e3   : > { %1769 = vst [vmem:[%s2964_s26 + $0x30] sm:$0xff] %v2300_v23 }
 0x2e4   : > { %v1716_v40 = vpop.f32.mrf.mxu0 }
 0x2e5   : > { %1767 = vst [vmem:[%s2964_s26 + $0x20] sm:$0xff] %v1716_v40 }
 0x2e6   : > { %v2301_v10 = vpop.f32.mrf.mxu0 }
 0x2e7   : > { %1770 = vst [vmem:[%s2964_s26 + $0x38] sm:$0xff] %v2301_v10 }
 0x2e8   : > { %v1719_v38 = vpop.f32.mrf.mxu0 }
 0x2e9   : > { %1768 = vst [vmem:[%s2964_s26 + $0x28] sm:$0xff] %v1719_v38 }
 0x2f2   : > { %v2304_v21 = vpop.f32.mrf.mxu1 }
 0x2f3   : > { %1773 = vst [vmem:[%s2964_s26 + $0x50] sm:$0xff] %v2304_v21 }
 0x2f4   : > { %v1732_v17 = vpop.f32.mrf.mxu1 }
 0x2f5   : > { %1771 = vst [vmem:[%s2964_s26 + $0x40] sm:$0xff] %v1732_v17 }
 0x2f6   : > { %v2305_v6 = vpop.f32.mrf.mxu1 }
 0x2f7   : > { %1774 = vst [vmem:[%s2964_s26 + $0x58] sm:$0xff] %v2305_v6 }
 0x2f8   : > { %v1735_v11 = vpop.f32.mrf.mxu1 }
 0x2f9   : > { %1772 = vst [vmem:[%s2964_s26 + $0x48] sm:$0xff] %v1735_v11 }
 0x302   : > { %v2308_v12 = vpop.f32.mrf.mxu1 }
 0x303   : > { %1777 = vst [vmem:[%s2964_s26 + $0x70] sm:$0xff] %v2308_v12 }
 0x304   : > { %v1748_v15 = vpop.f32.mrf.mxu1 }
 0x305   : > { %1775 = vst [vmem:[%s2964_s26 + $0x60] sm:$0xff] %v1748_v15 }
 0x306   : > { %v2309_v16 = vpop.f32.mrf.mxu1 }
 0x307   : > { %1778 = vst [vmem:[%s2964_s26 + $0x78] sm:$0xff] %v2309_v16 }
 0x308   : > { %v1751_v30 = vpop.f32.mrf.mxu1 }
 0x309   : > { %1776 = vst [vmem:[%s2964_s26 + $0x68] sm:$0xff] %v1751_v30 }
 0x30a PF: > { %s14_s15 = sadd.s32 1, %s2493_s15  }
 0x30b   : > { %p11_p4 = scmp.ge.s32.totalorder %s14_s15, 4  }
 0x30d   :  { %13 = sbr.rel (!%p11_p4) target bundleno = 1 (0x1), region = 66 }

</bundles_post_ra>
